<compile_context>
chip_gen: v7x
topology: tpu7x:2x2x1
jax: 0.10.0
libtpu: 0.0.40
codegen_flags: <defaults>
</compile_context>

<pallas_src>
import functools

import jax
import jax.numpy as jnp
from jax.experimental import pallas as pl
from jax.experimental.pallas import tpu as pltpu


# ---------------------------------------------------------------------------
# Pallas kernel: banded conv matmuls -> bias -> ReLU -> pool -> head
# ---------------------------------------------------------------------------
def _timm_base_kernel(x_ref, band_ref, bc_ref, wh_ref, bh_ref, out_ref,
                      feat_ref, *, bt, hp, h, k):
    # x_ref    : (bt*Hp, Wp*Cin)        bf16  padded input rows (batch folded)
    # band_ref : (K, Wp*Cin, W*Cout)    bf16  width-banded conv weights (per kh)
    # bc_ref   : (1, W*Cout)            f32   conv bias tiled over W
    # wh_ref   : (W*Cout, NCls)         f32   head weight tiled over W, /(H*W)
    # bh_ref   : (1, NCls)              f32
    # out_ref  : (bt, NCls)             f32
    # feat_ref : (bt, W*Cout)           f32   VMEM scratch (pooled features)
    x = x_ref[...]                                              # (bt*Hp, Wp*Cin)

    # One MXU pass per kernel-row offset; M dim covers the whole batch tile.
    y = [jnp.dot(x, band_ref[kh], preferred_element_type=jnp.float32)
         for kh in range(k)]                                    # K x (bt*Hp, W*Cout)

    for b in range(bt):                                         # unrolled, bt small
        base = b * hp
        conv = y[0][base:base + h]                              # (H, W*Cout) f32
        for kh in range(1, k):
            conv = conv + y[kh][base + kh:base + kh + h]
        conv = jnp.maximum(conv + bc_ref[...], 0.0)             # bias + ReLU (f32)
        # Pool over H here (sublane reduce); pool over W is folded into wh.
        feat_ref[b:b + 1, :] = jnp.sum(conv, axis=0, keepdims=True)

    logits = jnp.dot(feat_ref[...], wh_ref[...],
                     preferred_element_type=jnp.float32) + bh_ref[...]
    out_ref[...] = logits.astype(out_ref.dtype)                 # (bt, NCls)


# ---------------------------------------------------------------------------
# Batch-tile sizing (VMEM budget; conservative enough for v7x's 64 MiB VMEM)
# ---------------------------------------------------------------------------
def _pick_batch_tile(B, Hp, wpcin, wcout, K, budget_bytes=12 * 1024 * 1024):
    def block_bytes(bt):
        x_blk = bt * Hp * wpcin * 2 * 2            # bf16 input, double-buffered
        band = K * wpcin * wcout * 2 * 2           # bf16 band weights, double-buffered
        inter = K * bt * Hp * wcout * 4            # f32 per-kh matmul results
        return x_blk + band + inter

    if block_bytes(B) <= budget_bytes:
        return B                                   # whole batch, one grid step
    bt = (B // 8) * 8
    while bt >= 8:
        if B % bt == 0 and block_bytes(bt) <= budget_bytes:
            return bt
        bt -= 8
    return B


# ---------------------------------------------------------------------------
# Wrapper: layout glue + pallas_call
# ---------------------------------------------------------------------------
@functools.partial(jax.jit, static_argnames=("batch_tile",))
def timm_base_forward(x_nchw, w_conv, b_conv, w_head, b_head, *, batch_tile=None):
    """Forward pass matching TimmBase.forward for the synthetic backbone/head.

    x_nchw : (B, Cin, H, W) f32 (PyTorch layout)
    w_conv : (Cout, Cin, K, K), b_conv : (Cout,)
    w_head : (NCls, Cout),      b_head : (NCls,)
    returns (B, NCls) f32
    """
    B, Cin, H, W = x_nchw.shape
    Cout, _, K, _ = w_conv.shape
    NCls = w_head.shape[0]
    pad = K // 2
    Hp, Wp = H + 2 * pad, W + 2 * pad
    HW = H * W
    wpcin, wcout = Wp * Cin, W * Cout

    # NCHW -> NHWC, zero-pad spatial, flatten to the 2-D slab the kernel reads.
    x_nhwc = jnp.transpose(x_nchw, (0, 2, 3, 1))
    x_pad = jnp.pad(x_nhwc, ((0, 0), (pad, pad), (pad, pad), (0, 0)))
    x2d = x_pad.reshape(B * Hp, wpcin).astype(jnp.bfloat16)

    # Width-banded conv weights: band[kh, wp*Cin+c, w*Cout+co] =
    #   w_conv[co, c, kh, kw] if wp == w + kw else 0.
    wc_t = jnp.transpose(w_conv, (2, 3, 1, 0))                      # (K, K, Cin, Cout)
    sel = (jnp.arange(Wp)[None, :, None] ==
           (jnp.arange(W)[None, None, :] + jnp.arange(K)[:, None, None]))  # (K, Wp, W)
    band = jnp.einsum('kpw,hkco->hpcwo', sel.astype(w_conv.dtype), wc_t)
    band = band.reshape(K, wpcin, wcout).astype(jnp.bfloat16)

    bc = jnp.tile(b_conv, W).reshape(1, wcout).astype(jnp.float32)           # tiled bias
    wh = jnp.tile(w_head.T / HW, (W, 1)).astype(jnp.float32)                 # mean folded
    bh = b_head.reshape(1, NCls).astype(jnp.float32)

    bt = _pick_batch_tile(B, Hp, wpcin, wcout, K) if batch_tile is None else batch_tile
    grid = (B // bt,)

    flops = 2 * K * (B * Hp) * wpcin * wcout + 2 * B * wcout * NCls
    bytes_accessed = (x2d.size * 2 + band.size * 2 + bc.size * 4
                      + wh.size * 4 + bh.size * 4 + B * NCls * 4)
    cost = pl.CostEstimate(flops=flops, transcendentals=0,
                           bytes_accessed=bytes_accessed)

    kernel = functools.partial(_timm_base_kernel, bt=bt, hp=Hp, h=H, k=K)

    return pl.pallas_call(
        kernel,
        out_shape=jax.ShapeDtypeStruct((B, NCls), jnp.float32),
        grid_spec=pltpu.PrefetchScalarGridSpec(
            num_scalar_prefetch=0,
            grid=grid,
            in_specs=[
                pl.BlockSpec((bt * Hp, wpcin), lambda i: (i, 0)),
                pl.BlockSpec((K, wpcin, wcout), lambda i: (0, 0, 0)),
                pl.BlockSpec((1, wcout), lambda i: (0, 0)),
                pl.BlockSpec((wcout, NCls), lambda i: (0, 0)),
                pl.BlockSpec((1, NCls), lambda i: (0, 0)),
            ],
            out_specs=pl.BlockSpec((bt, NCls), lambda i: (i, 0)),
            scratch_shapes=[pltpu.VMEM((bt, wcout), jnp.float32)],
        ),
        compiler_params=pltpu.CompilerParams(
            dimension_semantics=("parallel",)),
        cost_estimate=cost,
    )(x2d, band, bc, wh, bh)


# ---------------------------------------------------------------------------
# Pure-JAX f32 reference (mirrors the PyTorch ops) for a correctness check.
# ---------------------------------------------------------------------------
def _reference(x_nchw, w_conv, b_conv, w_head, b_head):
    conv = jax.lax.conv_general_dilated(
        x_nchw, w_conv, window_strides=(1, 1), padding="SAME",
        dimension_numbers=("NCHW", "OIHW", "NCHW"))
    conv = conv + b_conv[None, :, None, None]
    conv = jnp.maximum(conv, 0.0)
    feat = jnp.mean(conv, axis=(2, 3))                              # (B, Cout)
    return feat @ w_head.T + b_head[None, :]


if __name__ == "__main__":
    B, Cin, H, W = 2, 4, 16, 16
    Cout, NCls, K = 32, 8, 3

    key = jax.random.PRNGKey(0)
    k_x, k_wc, k_bc, k_wh, k_bh = jax.random.split(key, 5)

    x = jax.random.normal(k_x, (B, Cin, H, W), dtype=jnp.float32)
    w_conv = 0.1 * jax.random.normal(k_wc, (Cout, Cin, K, K), dtype=jnp.float32)
    b_conv = 0.1 * jax.random.normal(k_bc, (Cout,), dtype=jnp.float32)
    w_head = 0.1 * jax.random.normal(k_wh, (NCls, Cout), dtype=jnp.float32)
    b_head = 0.1 * jax.random.normal(k_bh, (NCls,), dtype=jnp.float32)

    y = timm_base_forward(x, w_conv, b_conv, w_head, b_head)
    y = jax.block_until_ready(y)

    y_ref = _reference(x, w_conv, b_conv, w_head, b_head)
    assert y.shape == (B, NCls)
    # bf16 conv operands (f32 accumulation) -> relaxed tolerance vs f32 ref.
    assert jnp.allclose(y, y_ref, atol=2e-2, rtol=2e-2), (
        f"mismatch: max err {jnp.max(jnp.abs(y - y_ref))}")

    print("KERNEL_OK")
</pallas_src>

<mosaic_0001>
module attributes {stable_mosaic.version = 11 : i64} {
  func.func @_timm_base_kernel(%arg0: i32, %arg1: memref<36x72xbf16, #tpu.memory_space<vmem>>, %arg2: memref<3x72x512xbf16, #tpu.memory_space<vmem>>, %arg3: memref<1x512xf32, #tpu.memory_space<vmem>>, %arg4: memref<512x8xf32, #tpu.memory_space<vmem>>, %arg5: memref<1x8xf32, #tpu.memory_space<vmem>>, %arg6: memref<2x8xf32, #tpu.memory_space<vmem>>, %arg7: memref<2x512xf32, #tpu.memory_space<vmem>>) attributes {dimension_semantics = [#tpu.dimension_semantics<parallel>], iteration_bounds = array<i64: 1>, scalar_prefetch = 0 : i64, scratch_operands = 1 : i64, tpu.core_type = #tpu.core_type<tc>, window_params = [{transform_indices = @transform_0, window_bounds = array<i64: 36, 72>}, {pipeline_mode = #tpu.pipeline_mode<synchronous>, transform_indices = @transform_1, window_bounds = array<i64: 3, 72, 512>}, {pipeline_mode = #tpu.pipeline_mode<synchronous>, transform_indices = @transform_2, window_bounds = array<i64: 1, 512>}, {pipeline_mode = #tpu.pipeline_mode<synchronous>, transform_indices = @transform_3, window_bounds = array<i64: 512, 8>}, {pipeline_mode = #tpu.pipeline_mode<synchronous>, transform_indices = @transform_4, window_bounds = array<i64: 1, 8>}, {transform_indices = @transform_5, window_bounds = array<i64: 2, 8>}]} {
    %c0 = arith.constant 0 : index
    %c0_0 = arith.constant 0 : index
    %0 = vector.load %arg1[%c0, %c0_0] : memref<36x72xbf16, #tpu.memory_space<vmem>>, vector<36x72xbf16>
    %c0_1 = arith.constant 0 : index
    %c0_2 = arith.constant 0 : index
    %c0_3 = arith.constant 0 : index
    %1 = vector.load %arg2[%c0_1, %c0_2, %c0_3] : memref<3x72x512xbf16, #tpu.memory_space<vmem>>, vector<1x72x512xbf16>
    %2 = vector.shape_cast %1 : vector<1x72x512xbf16> to vector<72x512xbf16>
    %cst = arith.constant dense<0.000000e+00> : vector<36x512xf32>
    %3 = tpu.matmul %0, %2, %cst {dimension_numbers = #tpu.dot_dimension_numbers<[1], [0], [0], [1], [0, 0, 1, 1], [], []>} : vector<36x72xbf16>, vector<72x512xbf16>, vector<36x512xf32> -> vector<36x512xf32>
    %c1 = arith.constant 1 : index
    %c0_4 = arith.constant 0 : index
    %c0_5 = arith.constant 0 : index
    %4 = vector.load %arg2[%c1, %c0_4, %c0_5] : memref<3x72x512xbf16, #tpu.memory_space<vmem>>, vector<1x72x512xbf16>
    %5 = vector.shape_cast %4 : vector<1x72x512xbf16> to vector<72x512xbf16>
    %cst_6 = arith.constant dense<0.000000e+00> : vector<36x512xf32>
    %6 = tpu.matmul %0, %5, %cst_6 {dimension_numbers = #tpu.dot_dimension_numbers<[1], [0], [0], [1], [0, 0, 1, 1], [], []>} : vector<36x72xbf16>, vector<72x512xbf16>, vector<36x512xf32> -> vector<36x512xf32>
    %c2 = arith.constant 2 : index
    %c0_7 = arith.constant 0 : index
    %c0_8 = arith.constant 0 : index
    %7 = vector.load %arg2[%c2, %c0_7, %c0_8] : memref<3x72x512xbf16, #tpu.memory_space<vmem>>, vector<1x72x512xbf16>
    %8 = vector.shape_cast %7 : vector<1x72x512xbf16> to vector<72x512xbf16>
    %cst_9 = arith.constant dense<0.000000e+00> : vector<36x512xf32>
    %9 = tpu.matmul %0, %8, %cst_9 {dimension_numbers = #tpu.dot_dimension_numbers<[1], [0], [0], [1], [0, 0, 1, 1], [], []>} : vector<36x72xbf16>, vector<72x512xbf16>, vector<36x512xf32> -> vector<36x512xf32>
    %10 = vector.extract_strided_slice %3 {offsets = [0, 0], sizes = [16, 512], strides = [1, 1]} : vector<36x512xf32> to vector<16x512xf32>
    %11 = vector.extract_strided_slice %6 {offsets = [1, 0], sizes = [16, 512], strides = [1, 1]} : vector<36x512xf32> to vector<16x512xf32>
    %12 = arith.addf %10, %11 : vector<16x512xf32>
    %13 = vector.extract_strided_slice %9 {offsets = [2, 0], sizes = [16, 512], strides = [1, 1]} : vector<36x512xf32> to vector<16x512xf32>
    %14 = arith.addf %12, %13 : vector<16x512xf32>
    %c0_10 = arith.constant 0 : index
    %c0_11 = arith.constant 0 : index
    %15 = vector.load %arg3[%c0_10, %c0_11] : memref<1x512xf32, #tpu.memory_space<vmem>>, vector<1x512xf32>
    %16 = vector.broadcast %15 : vector<1x512xf32> to vector<16x512xf32>
    %17 = arith.addf %14, %16 : vector<16x512xf32>
    %cst_12 = arith.constant 0.000000e+00 : f32
    %18 = vector.broadcast %cst_12 : f32 to vector<16x512xf32>
    %19 = arith.maximumf %17, %18 : vector<16x512xf32>
    %cst_13 = arith.constant dense<0.000000e+00> : vector<512xf32>
    %20 = vector.multi_reduction <add>, %19, %cst_13 [0] : vector<16x512xf32> to vector<512xf32>
    %21 = vector.shape_cast %20 : vector<512xf32> to vector<1x512xf32>
    %c0_14 = arith.constant 0 : index
    %c0_15 = arith.constant 0 : index
    %22 = vector.load %arg7[%c0_14, %c0_15] : memref<2x512xf32, #tpu.memory_space<vmem>>, vector<1x512xf32>
    tpu.vector_store %arg7[%c0_14, %c0_15], %21 {strides = array<i32>} : memref<2x512xf32, #tpu.memory_space<vmem>>, vector<1x512xf32>,
    %23 = vector.extract_strided_slice %3 {offsets = [18, 0], sizes = [16, 512], strides = [1, 1]} : vector<36x512xf32> to vector<16x512xf32>
    %24 = vector.extract_strided_slice %6 {offsets = [19, 0], sizes = [16, 512], strides = [1, 1]} : vector<36x512xf32> to vector<16x512xf32>
    %25 = arith.addf %23, %24 : vector<16x512xf32>
    %26 = vector.extract_strided_slice %9 {offsets = [20, 0], sizes = [16, 512], strides = [1, 1]} : vector<36x512xf32> to vector<16x512xf32>
    %27 = arith.addf %25, %26 : vector<16x512xf32>
    %c0_16 = arith.constant 0 : index
    %c0_17 = arith.constant 0 : index
    %28 = vector.load %arg3[%c0_16, %c0_17] : memref<1x512xf32, #tpu.memory_space<vmem>>, vector<1x512xf32>
    %29 = vector.broadcast %28 : vector<1x512xf32> to vector<16x512xf32>
    %30 = arith.addf %27, %29 : vector<16x512xf32>
    %cst_18 = arith.constant 0.000000e+00 : f32
    %31 = vector.broadcast %cst_18 : f32 to vector<16x512xf32>
    %32 = arith.maximumf %30, %31 : vector<16x512xf32>
    %cst_19 = arith.constant dense<0.000000e+00> : vector<512xf32>
    %33 = vector.multi_reduction <add>, %32, %cst_19 [0] : vector<16x512xf32> to vector<512xf32>
    %34 = vector.shape_cast %33 : vector<512xf32> to vector<1x512xf32>
    %c1_20 = arith.constant 1 : index
    %c0_21 = arith.constant 0 : index
    %35 = vector.load %arg7[%c1_20, %c0_21] : memref<2x512xf32, #tpu.memory_space<vmem>>, vector<1x512xf32>
    tpu.vector_store %arg7[%c1_20, %c0_21], %34 {strides = array<i32>} : memref<2x512xf32, #tpu.memory_space<vmem>>, vector<1x512xf32>,
    %c0_22 = arith.constant 0 : index
    %c0_23 = arith.constant 0 : index
    %36 = vector.load %arg7[%c0_22, %c0_23] : memref<2x512xf32, #tpu.memory_space<vmem>>, vector<2x512xf32>
    %c0_24 = arith.constant 0 : index
    %c0_25 = arith.constant 0 : index
    %37 = vector.load %arg4[%c0_24, %c0_25] : memref<512x8xf32, #tpu.memory_space<vmem>>, vector<512x8xf32>
    %cst_26 = arith.constant dense<0.000000e+00> : vector<2x8xf32>
    %38 = tpu.matmul %36, %37, %cst_26 {dimension_numbers = #tpu.dot_dimension_numbers<[1], [0], [0], [1], [0, 0, 1, 1], [], []>} : vector<2x512xf32>, vector<512x8xf32>, vector<2x8xf32> -> vector<2x8xf32>
    %c0_27 = arith.constant 0 : index
    %c0_28 = arith.constant 0 : index
    %39 = vector.load %arg5[%c0_27, %c0_28] : memref<1x8xf32, #tpu.memory_space<vmem>>, vector<1x8xf32>
    %40 = vector.broadcast %39 : vector<1x8xf32> to vector<2x8xf32>
    %41 = arith.addf %38, %40 : vector<2x8xf32>
    %c0_29 = arith.constant 0 : index
    %c0_30 = arith.constant 0 : index
    %42 = vector.load %arg6[%c0_29, %c0_30] : memref<2x8xf32, #tpu.memory_space<vmem>>, vector<2x8xf32>
    tpu.vector_store %arg6[%c0_29, %c0_30], %41 {strides = array<i32>} : memref<2x8xf32, #tpu.memory_space<vmem>>, vector<2x8xf32>,
    return
  }
  func.func @transform_0(%arg0: i32) -> (i32, i32) {
    %c0_i32 = arith.constant 0 : i32
    %c0_i32_0 = arith.constant 0 : i32
    return %arg0, %c0_i32 : i32, i32
  }
  func.func @transform_1(%arg0: i32) -> (i32, i32, i32) {
    %c0_i32 = arith.constant 0 : i32
    %c0_i32_0 = arith.constant 0 : i32
    %c0_i32_1 = arith.constant 0 : i32
    %c0_i32_2 = arith.constant 0 : i32
    return %c0_i32, %c0_i32_0, %c0_i32_1 : i32, i32, i32
  }
  func.func @transform_2(%arg0: i32) -> (i32, i32) {
    %c0_i32 = arith.constant 0 : i32
    %c0_i32_0 = arith.constant 0 : i32
    %c0_i32_1 = arith.constant 0 : i32
    return %c0_i32, %c0_i32_0 : i32, i32
  }
  func.func @transform_3(%arg0: i32) -> (i32, i32) {
    %c0_i32 = arith.constant 0 : i32
    %c0_i32_0 = arith.constant 0 : i32
    %c0_i32_1 = arith.constant 0 : i32
    return %c0_i32, %c0_i32_0 : i32, i32
  }
  func.func @transform_4(%arg0: i32) -> (i32, i32) {
    %c0_i32 = arith.constant 0 : i32
    %c0_i32_0 = arith.constant 0 : i32
    %c0_i32_1 = arith.constant 0 : i32
    return %c0_i32, %c0_i32_0 : i32, i32
  }
  func.func @transform_5(%arg0: i32) -> (i32, i32) {
    %c0_i32 = arith.constant 0 : i32
    %c0_i32_0 = arith.constant 0 : i32
    return %arg0, %c0_i32 : i32, i32
  }
}

</mosaic_0001>

<bundles_post_ra>
// kernel: tile.13
= control target key start
LH: loop header
LB: loop body
LE: loop exit
PB: predicated region body
PF: predicated region fallthrough
CT: control target
= control target key end

     0   :  { %s28_s0 = inlined_call_operand.vmem [shape: f32[32], index: 0, kind: input, shape index: {}]   ;;  %s29_s1 = inlined_call_operand.vmem [shape: f32[16,32], index: 1, kind: output, shape index: {}]  }
   0x1   :  { %v4_v0 = vld [vmem:[%s28_s0] ss:$0 sm:$0xff] }
   0x2   :  { %5 = vst [vmem:[%s29_s1] sm:$0xff] %v4_v0  ;;  %8 = vst [vmem:[%s29_s1 + $0x8] sm:$0xff] %v4_v0 }

// kernel: tile.14
= control target key start
LH: loop header
LB: loop body
LE: loop exit
PB: predicated region body
PF: predicated region fallthrough
CT: control target
= control target key end

     0   :  { %s57_s8 = smov 96   ;;  %vm3_vm0 = vcmask 261120   ;;  %s59_s15 = smov 64   ;;  %vm9_vm1 = vcmask 1048320   ;;  %vm15_vm2 = vcmask 785920   ;;  %vm21_vm3 = vcmask 523520   ;;  %s94_s0 = inlined_call_operand.vmem [shape: f32[16,32], index: 0, kind: input, shape index: {}]   ;;  %s95_s1 = inlined_call_operand.vmem [shape: f32[1,512], index: 1, kind: output, shape index: {}]  }
   0x1   :  { %v48_v0 = vld [vmem:[%s94_s0 + $0x3] ss:$4 sm:$0xf]   ;;  %v49_v1 = vld [vmem:[%s94_s0 + $0x2] ss:$4 sm:$0xf]  }
   0x2   :  { %7 = vrot.lane.b32.xlu0 %v48_v0, %s57_s8  ;;  %v50_v2 = vld [vmem:[%s94_s0 + $0x1] ss:$4 sm:$0xf]   ;;  %v2_v3 = vld [vmem:[%s94_s0] ss:$4 sm:$0xf]  }
   0x3   :  { %s58_s0 = smov 32   ;;  %4 = vst.msk [vmem:[#allocation0] ss:$8 sm:$0xf] %vm3_vm0, %v2_v3  }
   0x4   :  { %19 = vrot.lane.b32.xlu1 %v50_v2, %s58_s0 }
   0x6   :  { %13 = vrot.lane.b32.xlu0 %v49_v1, %s59_s15 }
  0x74   :  { %v8_v4 = vpop.permute.xlu0 %7  }
  0x75   :  { %10 = vst.msk [vmem:[#allocation0] ss:$8 sm:$0xf] %vm9_vm1, %v8_v4  }
  0x76   :  { %v20_v5 = vpop.permute.xlu1 %19  }
  0x78   :  { %v14_v6 = vpop.permute.xlu0 %13  }
  0x79   :  { %16 = vst.msk [vmem:[#allocation0] ss:$8 sm:$0xf] %vm15_vm2, %v14_v6  }
  0x7a   :  { %22 = vst.msk [vmem:[#allocation0] ss:$8 sm:$0xf] %vm21_vm3, %v20_v5  }
  0x81   :  { %v26_v7 = vld [vmem:[#allocation0] sm:$0x1]  ;;  %v30_v8 = vld [vmem:[#allocation0 + $0x8] sm:$0x1]  ;;  %v35_v9 = vld [vmem:[#allocation0 + $0x10] sm:$0x1] }
  0x82   :  { %28 = vst [vmem:[%s95_s1] sm:$0x1] %v26_v7  ;;  %51 = vst [vmem:[%s95_s1 + $0x1] sm:$0x1] %v30_v8  ;;  %v41_v10 = vld [vmem:[#allocation0 + $0x18] sm:$0x1] }
  0x83   :  { %52 = vst [vmem:[%s95_s1 + $0x2] sm:$0x1] %v35_v9  ;;  %53 = vst [vmem:[%s95_s1 + $0x3] sm:$0x1] %v41_v10 }

// kernel: timm_base_forward.1
= control target key start
LH: loop header
LB: loop body
LE: loop exit
PB: predicated region body
PF: predicated region fallthrough
CT: control target
= control target key end

     0   :  { %v1842_v2 = vmov 0   ;;  %vm158_vm0 = vcmask 1043456   ;;  %vm148_vm1 = vcmask 588800   ;;  %s2569_s0 = inlined_call_operand.vmem [shape: bf16[36,72], index: 0, kind: input, shape index: {}]   ;;  %s2570_s1 = inlined_call_operand.vmem [shape: bf16[3,72,512], index: 1, kind: input, shape index: {}]   ;;  %s2571_s2 = inlined_call_operand.vmem [shape: f32[1,512], index: 2, kind: input, shape index: {}]   ;;  %s2572_s3 = inlined_call_operand.vmem [shape: f32[512,8], index: 3, kind: input, shape index: {}]   ;;  %s2573_s4 = inlined_call_operand.vmem [shape: f32[1,8], index: 4, kind: input, shape index: {}]   ;;  %s2574_s5 = inlined_call_operand.hbm [shape: f32[2,8], index: 5, kind: output, shape index: {}]  }
   0x1   :  { %v1730_v0 = vld [vmem:[%s2570_s1 + $0x4] ss:$16 sps:$4 sm:$0xff]   ;;  %v1732_v1 = vld [vmem:[%s2570_s1 + $0xc] ss:$16 sps:$4 sm:$0xff]   ;;  %203 = vmatprep.mubr.bf16.mxu0 %v1842_v2  ;;  %264 = vmatprep.mubr.bf16.mxu1 %v1842_v2  ;;  %v1734_v3 = vld [vmem:[%s2570_s1] ss:$16 sps:$4 sm:$0xff]  }
   0x2   :  { %171 = vmatprep.subr.bf16.mxu0 %v1730_v0  ;;  %v1735_v4 = vld [vmem:[%s2570_s1 + $0x8] ss:$16 sps:$4 sm:$0xff]   ;;  %232 = vmatprep.subr.bf16.mxu1 %v1732_v1  ;;  %v1736_v5 = vld [vmem:[%s2570_s1 + $0x24] ss:$16 sps:$4 sm:$0xff]   ;;  %v1738_v6 = vld [vmem:[%s2570_s1 + $0x2c] ss:$16 sps:$4 sm:$0xff]  }
   0x3   :  { %172 = vmatpush1.bf16.msra.mxu0 %v1734_v3  ;;  %233 = vmatpush1.bf16.msra.mxu1 %v1735_v4  ;;  %v1740_v7 = vld [vmem:[%s2570_s1 + $0x20] ss:$16 sps:$4 sm:$0xff]   ;;  %v1741_v8 = vld [vmem:[%s2570_s1 + $0x28] ss:$16 sps:$4 sm:$0xff]   ;;  %v1742_v9 = vld [vmem:[%s2570_s1 + $0x44] ss:$16 sps:$4 sm:$0xff]  }
   0x4   :  { %173 = vmatprep.subr.bf16.mxu0 %v1736_v5  ;;  %234 = vmatprep.subr.bf16.mxu1 %v1738_v6  ;;  %v1744_v10 = vld [vmem:[%s2570_s1 + $0x4c] ss:$16 sps:$4 sm:$0xff]   ;;  %v1746_v11 = vld [vmem:[%s2570_s1 + $0x40] ss:$16 sps:$4 sm:$0xff]   ;;  %v1747_v12 = vld [vmem:[%s2570_s1 + $0x48] ss:$16 sps:$4 sm:$0xff]  }
   0x5   :  { %v1748_v13 = vld [vmem:[%s2570_s1 + $0x64] ss:$16 sps:$4 sm:$0xff]   ;;  %v1750_v14 = vld [vmem:[%s2570_s1 + $0x6c] ss:$16 sps:$4 sm:$0xff]   ;;  %v1752_v15 = vld [vmem:[%s2570_s1 + $0x60] ss:$16 sps:$4 sm:$0xff]  }
   0x6   :  { %v43_v16 = vld [vmem:[%s2570_s1 + $0x80] sm:$0xff]  ;;  %v44_v17 = vld [vmem:[%s2570_s1 + $0x88] sm:$0xff]  ;;  %v1515_v40 = vld [vmem:[%s2570_s1 + $0x110] sm:$0xff] }
   0x7   :  { %174 = vmatpush1.bf16.msra.mxu0 %v1740_v7  ;;  %235 = vmatpush1.bf16.msra.mxu1 %v1741_v8  ;;  %v1753_v18 = vld [vmem:[%s2570_s1 + $0x68] ss:$16 sps:$4 sm:$0xff]   ;;  %v1488_v19 = vcombine.high %v43_v16, %v43_v16  ;;  %v1490_v20 = vcombine.high %v44_v17, %v44_v17  ;;  %v1487_v21 = vcombine.low %v43_v16, %v43_v16  ;;  %v1761_v23 = vld [vmem:[%s2570_s1 + $0x94] ss:$16 sps:$4 sm:$0xff]   ;;  %v1764_v26 = vld [vmem:[%s2570_s1 + $0x9c] ss:$16 sps:$4 sm:$0xff]  }
   0x8   :  { %175 = vmatprep.subr.bf16.mxu0 %v1742_v9  ;;  %236 = vmatprep.subr.bf16.mxu1 %v1744_v10  ;;  %v1489_v22 = vcombine.low %v44_v17, %v44_v17  ;;  %v1945_v27 = vld [vmem:[%s2569_s0] sm:$0xff]   ;;  %v1762_v29 = vld [vmem:[%s2570_s1 + $0x98] ss:$16 sps:$4 sm:$0xff]   ;;  %v1770_v31 = vld [vmem:[%s2570_s1 + $0xbc] ss:$16 sps:$4 sm:$0xff]   ;;  %v1534_v45 = vcombine.high %v1515_v40, %v1515_v40  ;;  %v1533_v47 = vcombine.low %v1515_v40, %v1515_v40 }
   0x9   :  { %v160_v24 = vsel %vm158_vm0, %v1487_v21, 0  ;;  %v1759_v28 = vld [vmem:[%s2570_s1 + $0x90] ss:$16 sps:$4 sm:$0xff]   ;;  %v1767_v30 = vld [vmem:[%s2570_s1 + $0xb4] ss:$16 sps:$4 sm:$0xff]   ;;  %v1980_v36 = vld [vmem:[%s2569_s0 + $0x8] sm:$0xff]  }
   0xa   :  { %v166_v25 = vsel %vm158_vm0, %v1489_v22, 0  ;;  %v1765_v32 = vld [vmem:[%s2570_s1 + $0xb0] ss:$16 sps:$4 sm:$0xff]   ;;  %v1768_v33 = vld [vmem:[%s2570_s1 + $0xb8] ss:$16 sps:$4 sm:$0xff]  }
   0xb   :  { %176 = vmatpush1.bf16.msra.mxu0 %v1746_v11  ;;  %237 = vmatpush1.bf16.msra.mxu1 %v1747_v12  ;;  %v1774_v34 = vld [vmem:[%s2570_s1 + $0xd4] ss:$16 sps:$4 sm:$0xff]   ;;  %v1777_v35 = vld [vmem:[%s2570_s1 + $0xdc] ss:$16 sps:$4 sm:$0xff]   ;;  %v1772_v37 = vld [vmem:[%s2570_s1 + $0xd0] ss:$16 sps:$4 sm:$0xff]  }
   0xc   :  { %177 = vmatprep.subr.bf16.mxu0 %v1748_v13  ;;  %238 = vmatprep.subr.bf16.mxu1 %v1750_v14  ;;  %v1775_v38 = vld [vmem:[%s2570_s1 + $0xd8] ss:$16 sps:$4 sm:$0xff]   ;;  %v1780_v39 = vld [vmem:[%s2570_s1 + $0xf4] ss:$16 sps:$4 sm:$0xff]   ;;  %v1783_v41 = vld [vmem:[%s2570_s1 + $0xfc] ss:$16 sps:$4 sm:$0xff]  }
   0xd   :  { %v1516_v42 = vld [vmem:[%s2570_s1 + $0x118] sm:$0xff]  ;;  %v1778_v43 = vld [vmem:[%s2570_s1 + $0xf0] ss:$16 sps:$4 sm:$0xff]  }
   0xe   :  { %v1781_v44 = vld [vmem:[%s2570_s1 + $0xf8] ss:$16 sps:$4 sm:$0xff]   ;;  %v1536_v46 = vcombine.high %v1516_v42, %v1516_v42  ;;  %v1535_v48 = vcombine.low %v1516_v42, %v1516_v42  ;;  %v2015_v49 = vld [vmem:[%s2569_s0 + $0x10] ss:$0 sps:$4 sm:$0x33]  }
   0xf   :  { %178 = vmatpush1.bf16.msra.mxu0 %v1752_v15  ;;  %239 = vmatpush1.bf16.msra.mxu1 %v1753_v18 }
  0x10   :  { %1491 = vmatprep.subr.msk.bf16.mxu0 %vm158_vm0, %v1488_v19  ;;  %1495 = vmatprep.subr.msk.bf16.mxu1 %vm158_vm0, %v1490_v20 }
  0x13   :  { %180 = vmatpush1.bf16.msra.mxu0 %v160_v24  ;;  %241 = vmatpush1.bf16.msra.mxu1 %v166_v25 }
  0x14   :  { %414 = vmatprep.subr.bf16.mxu0 %v1761_v23  ;;  %475 = vmatprep.subr.bf16.mxu1 %v1764_v26 }
  0x16   :  { %1492 = vmatmul.mubr.msk.bf16.vlgmr.msra.gmra.mrb[0].mxu0 %vm148_vm1, %v1945_v27  ;;  %1496 = vmatmul.mubr.msk.bf16.vlgmr.msra.gmra.mrb[0].mxu1 %vm148_vm1, %v1945_v27 }
  0x17   :  { %415 = vmatpush1.bf16.msra.mxu0 %v1759_v28  ;;  %476 = vmatpush1.bf16.msra.mxu1 %v1762_v29 }
  0x18   :  { %416 = vmatprep.subr.bf16.mxu0 %v1767_v30  ;;  %477 = vmatprep.subr.bf16.mxu1 %v1770_v31 }
  0x19   :  { %213 = vmatprep.mubr.bf16.mxu0 %v1842_v2  ;;  %274 = vmatprep.mubr.bf16.mxu1 %v1842_v2 }
  0x1b   :  { %417 = vmatpush1.bf16.msra.mxu0 %v1765_v32  ;;  %478 = vmatpush1.bf16.msra.mxu1 %v1768_v33 }
  0x1c   :  { %418 = vmatprep.subr.bf16.mxu0 %v1774_v34  ;;  %479 = vmatprep.subr.bf16.mxu1 %v1777_v35 }
  0x1e   :  { %1493 = vmatmul.mubr.msk.bf16.gmra.mrb[4].mxu0 %vm148_vm1, %v1980_v36  ;;  %1497 = vmatmul.mubr.msk.bf16.gmra.mrb[4].mxu1 %vm148_vm1, %v1980_v36 }
  0x1f   :  { %419 = vmatpush1.bf16.msra.mxu0 %v1772_v37  ;;  %480 = vmatpush1.bf16.msra.mxu1 %v1775_v38 }
  0x20   :  { %223 = vmatprep.mubr.bf16.mxu0 %v1842_v2  ;;  %284 = vmatprep.mubr.bf16.mxu1 %v1842_v2 }
  0x21   :  { %420 = vmatprep.subr.bf16.mxu0 %v1780_v39  ;;  %481 = vmatprep.subr.bf16.mxu1 %v1783_v41 }
  0x23   :  { %421 = vmatpush1.bf16.msra.mxu0 %v1778_v43  ;;  %482 = vmatpush1.bf16.msra.mxu1 %v1781_v44 }
  0x24   :  { %10 = vsyncpa [#allocation4], 0  ;;  %1537 = vmatprep.subr.msk.bf16.mxu0 %vm158_vm0, %v1534_v45  ;;  %1541 = vmatprep.subr.msk.bf16.mxu1 %vm158_vm0, %v1536_v46  ;;  %v403_v50 = vsel %vm158_vm0, %v1533_v47, 0  ;;  %v409_v51 = vsel %vm158_vm0, %v1535_v48, 0  ;;  %v1791_v52 = vld [vmem:[%s2570_s1 + $0x124] ss:$16 sps:$4 sm:$0xff]  }
  0x25   :  { %v1794_v53 = vld [vmem:[%s2570_s1 + $0x12c] ss:$16 sps:$4 sm:$0xff]   ;;  %v1789_v54 = vld [vmem:[%s2570_s1 + $0x120] ss:$16 sps:$4 sm:$0xff]   ;;  %v1792_v55 = vld [vmem:[%s2570_s1 + $0x128] ss:$16 sps:$4 sm:$0xff]  }
  0x26   :  { %1494 = vmatmul.mubr.msk.bf16.gmra.mrb[8].mxu0 %vm148_vm1, %v2015_v49  ;;  %1498 = vmatmul.mubr.msk.bf16.gmra.mrb[8].mxu1 %vm148_vm1, %v2015_v49  ;;  %v1797_v56 = vld [vmem:[%s2570_s1 + $0x144] ss:$16 sps:$4 sm:$0xff]   ;;  %v1800_v57 = vld [vmem:[%s2570_s1 + $0x14c] ss:$16 sps:$4 sm:$0xff]   ;;  %v1795_v58 = vld [vmem:[%s2570_s1 + $0x140] ss:$16 sps:$4 sm:$0xff]  }
  0x27   :  { %423 = vmatpush1.bf16.msra.mxu0 %v403_v50  ;;  %484 = vmatpush1.bf16.msra.mxu1 %v409_v51  ;;  %v1798_v59 = vld [vmem:[%s2570_s1 + $0x148] ss:$16 sps:$4 sm:$0xff]   ;;  %v1803_v60 = vld [vmem:[%s2570_s1 + $0x164] ss:$16 sps:$4 sm:$0xff]   ;;  %v1806_v61 = vld [vmem:[%s2570_s1 + $0x16c] ss:$16 sps:$4 sm:$0xff]  }
  0x28   :  { %446 = vmatprep.mubr.bf16.mxu0 %v1842_v2  ;;  %507 = vmatprep.mubr.bf16.mxu1 %v1842_v2  ;;  %v1801_v62 = vld [vmem:[%s2570_s1 + $0x160] ss:$16 sps:$4 sm:$0xff]   ;;  %v1804_v63 = vld [vmem:[%s2570_s1 + $0x168] ss:$16 sps:$4 sm:$0xff]   ;;  %v1809_v1 = vld [vmem:[%s2570_s1 + $0x184] ss:$16 sps:$4 sm:$0xff]  }
  0x29   :  { %657 = vmatprep.subr.bf16.mxu0 %v1791_v52  ;;  %718 = vmatprep.subr.bf16.mxu1 %v1794_v53  ;;  %v1561_v0 = vld [vmem:[%s2570_s1 + $0x1a0] sm:$0xff]  ;;  %v1812_v3 = vld [vmem:[%s2570_s1 + $0x18c] ss:$16 sps:$4 sm:$0xff]   ;;  %v1810_v6 = vld [vmem:[%s2570_s1 + $0x188] ss:$16 sps:$4 sm:$0xff]   ;;  %vm791_vm2 = vcmask 1046528  }
  0x2a   :  { %v1562_v4 = vld [vmem:[%s2570_s1 + $0x1a8] sm:$0xff]  ;;  %v1807_v5 = vld [vmem:[%s2570_s1 + $0x180] ss:$16 sps:$4 sm:$0xff]   ;;  %v1580_v7 = vcombine.high %v1561_v0, %v1561_v0  ;;  %v1579_v9 = vcombine.low %v1561_v0, %v1561_v0  ;;  %v1238_v25 = vld [vmem:[%s2572_s3 + $0x98] sm:$0xff]  ;;  %vm840_vm3 = vcmask 1045504   ;;  %s1845_s27 = smov [#allocation3]  }
  0x2b   :  { %v1582_v8 = vcombine.high %v1562_v4, %v1562_v4  ;;  %v1581_v10 = vcombine.low %v1562_v4, %v1562_v4  ;;  %v1235_v13 = vld [vmem:[%s2572_s3 + $0x80] sm:$0xff]  ;;  %v1236_v14 = vld [vmem:[%s2572_s3 + $0x88] sm:$0xff]  ;;  %v1237_v24 = vld [vmem:[%s2572_s3 + $0x90] sm:$0xff]  ;;  %s1460_s28 = sshll.u32 %s1845_s27, 4  ;;  %vm1452_vm5 = vcmask 58368   ;;  %s1461_s28 = int_to_ptr.vmem [resolvable:$true] %s1460_s28 }
  0x2c   :  { %v646_v11 = vsel %vm158_vm0, %v1579_v9, 0  ;;  %v1662_v15 = vpack.c.bf16 %v1236_v14, %v1235_v13  ;;  %v1219_v16 = vld [vmem:[%s2572_s3] sm:$0xff]  ;;  %v1268_v19 = vld [vmem:[%s2572_s3 + $0x188] sm:$0xff]  ;;  %v1666_v26 = vpack.c.bf16 %v1238_v25, %v1237_v24  ;;  %v1222_v28 = vld [vmem:[%s2572_s3 + $0x18] sm:$0xff]  ;;  %s1818_s29 = scalar_lea.vmem %s1461_s28, 32  ;;  %p1823_p1 = scmp.lt.s32.totalorder %s1461_s28, %s1461_s28 }
  0x2d   :  { %v652_v12 = vsel %vm158_vm0, %v1581_v10, 0  ;;  %v1267_v18 = vld [vmem:[%s2572_s3 + $0x180] sm:$0xff]  ;;  %v1252_v22 = vld [vmem:[%s2572_s3 + $0x108] sm:$0xff]  ;;  %v1269_v30 = vld [vmem:[%s2572_s3 + $0x190] sm:$0xff]  ;;  %p1819_p0 = scmp.ne.s32.totalorder %s1461_s28, %s1818_s29  ;;  %p1824_p2 = scmp.lt.s32.totalorder %s1818_s29, %s1818_s29 }
  0x2e   :  { %1538 = vmatmul.mubr.msk.bf16.vlgmr.msra.gmra.mrb[12].mxu0 %vm148_vm1, %v1945_v27  ;;  %1542 = vmatmul.mubr.msk.bf16.vlgmr.msra.gmra.mrb[12].mxu1 %vm148_vm1, %v1945_v27  ;;  %v1694_v20 = vpack.c.bf16 %v1268_v19, %v1267_v18  ;;  %v1251_v21 = vld [vmem:[%s2572_s3 + $0x100] sm:$0xff]  ;;  %v1270_v31 = vld [vmem:[%s2572_s3 + $0x198] sm:$0xff]  ;;  %v1253_v33 = vld [vmem:[%s2572_s3 + $0x110] sm:$0xff] }
  0x2f   :  { %658 = vmatpush1.bf16.msra.mxu0 %v1789_v54  ;;  %719 = vmatpush1.bf16.msra.mxu1 %v1792_v55  ;;  %v1696_v23 = vpack.c.bf16 %v1252_v22, %v1251_v21  ;;  %v1698_v32 = vpack.c.bf16 %v1270_v31, %v1269_v30  ;;  %v1254_v34 = vld [vmem:[%s2572_s3 + $0x118] sm:$0xff]  ;;  %v1240_v37 = vld [vmem:[%s2572_s3 + $0xa8] sm:$0xff]  ;;  %v1223_v39 = vld [vmem:[%s2572_s3 + $0x20] sm:$0xff]  ;;  %p1825_p3 = por %p1824_p2, %p1823_p1 }
  0x30   :  { %659 = vmatprep.subr.bf16.mxu0 %v1797_v56  ;;  %720 = vmatprep.subr.bf16.mxu1 %v1800_v57  ;;  %v1700_v35 = vpack.c.bf16 %v1254_v34, %v1253_v33  ;;  %v1224_v40 = vld [vmem:[%s2572_s3 + $0x28] sm:$0xff]  ;;  %v1271_v42 = vld [vmem:[%s2572_s3 + $0x1a0] sm:$0xff]  ;;  %v1241_v48 = vld [vmem:[%s2572_s3 + $0xb0] sm:$0xff] }
  0x31   :  { %456 = vmatprep.mubr.bf16.mxu0 %v1842_v2  ;;  %517 = vmatprep.mubr.bf16.mxu1 %v1842_v2  ;;  %v1672_v41 = vpack.c.bf16 %v1224_v40, %v1223_v39  ;;  %v1272_v43 = vld [vmem:[%s2572_s3 + $0x1a8] sm:$0xff]  ;;  %v1255_v45 = vld [vmem:[%s2572_s3 + $0x120] sm:$0xff]  ;;  %v1225_v51 = vld [vmem:[%s2572_s3 + $0x30] sm:$0xff]  ;;  %p1826_p4 = pnand %p1825_p3, %p1819_p0 }
  0x32   :  { %v1702_v44 = vpack.c.bf16 %v1272_v43, %v1271_v42  ;;  %v1256_v46 = vld [vmem:[%s2572_s3 + $0x128] sm:$0xff]  ;;  %v1226_v52 = vld [vmem:[%s2572_s3 + $0x38] sm:$0xff]  ;;  %v1273_v54 = vld [vmem:[%s2572_s3 + $0x1b0] sm:$0xff] }
  0x33   :  { %660 = vmatpush1.bf16.msra.mxu0 %v1795_v58  ;;  %721 = vmatpush1.bf16.msra.mxu1 %v1798_v59  ;;  %v1704_v47 = vpack.c.bf16 %v1256_v46, %v1255_v45  ;;  %v1676_v53 = vpack.c.bf16 %v1226_v52, %v1225_v51  ;;  %v1274_v55 = vld [vmem:[%s2572_s3 + $0x1b8] sm:$0xff]  ;;  %v1257_v57 = vld [vmem:[%s2572_s3 + $0x130] sm:$0xff]  ;;  %v1228_v0 = vld [vmem:[%s2572_s3 + $0x48] sm:$0xff] }
  0x34   :  { %661 = vmatprep.subr.bf16.mxu0 %v1803_v60  ;;  %722 = vmatprep.subr.bf16.mxu1 %v1806_v61  ;;  %v1706_v56 = vpack.c.bf16 %v1274_v55, %v1273_v54  ;;  %v1258_v58 = vld [vmem:[%s2572_s3 + $0x138] sm:$0xff]  ;;  %v1243_v60 = vld [vmem:[%s2572_s3 + $0xc0] sm:$0xff]  ;;  %v1244_v61 = vld [vmem:[%s2572_s3 + $0xc8] sm:$0xff] }
  0x35   :  { %v1708_v59 = vpack.c.bf16 %v1258_v58, %v1257_v57  ;;  %v1276_v4 = vld [vmem:[%s2572_s3 + $0x1c8] sm:$0xff]  ;;  %v1245_v9 = vld [vmem:[%s2572_s3 + $0xd0] sm:$0xff]  ;;  %v1246_v10 = vld [vmem:[%s2572_s3 + $0xd8] sm:$0xff] }
  0x36   :  { %1539 = vmatmul.mubr.msk.bf16.gmra.mrb[16].mxu0 %vm148_vm1, %v1980_v36  ;;  %1543 = vmatmul.mubr.msk.bf16.gmra.mrb[16].mxu1 %vm148_vm1, %v1980_v36  ;;  %v1230_v13 = vld [vmem:[%s2572_s3 + $0x58] sm:$0xff]  ;;  %v1277_v14 = vld [vmem:[%s2572_s3 + $0x1d0] sm:$0xff]  ;;  %v1248_v21 = vld [vmem:[%s2572_s3 + $0xe8] sm:$0xff] }
  0x37   :  { %662 = vmatpush1.bf16.msra.mxu0 %v1801_v62  ;;  %723 = vmatpush1.bf16.msra.mxu1 %v1804_v63  ;;  %v1678_v62 = vpack.c.bf16 %v1244_v61, %v1243_v60  ;;  %v1227_v63 = vld [vmem:[%s2572_s3 + $0x40] sm:$0xff]  ;;  %v1232_v24 = vld [vmem:[%s2572_s3 + $0x68] sm:$0xff]  ;;  %v1249_v31 = vld [vmem:[%s2572_s3 + $0xf0] sm:$0xff] }
  0x38   :  { %466 = vmatprep.mubr.bf16.mxu0 %v1842_v2  ;;  %527 = vmatprep.mubr.bf16.mxu1 %v1842_v2  ;;  %v1231_v22 = vld [vmem:[%s2572_s3 + $0x60] sm:$0xff]  ;;  %v1264_v30 = vld [vmem:[%s2572_s3 + $0x168] sm:$0xff]  ;;  %v1250_v33 = vld [vmem:[%s2572_s3 + $0xf8] sm:$0xff] }
  0x39   :  { %663 = vmatprep.subr.bf16.mxu0 %v1809_v1  ;;  %724 = vmatprep.subr.bf16.mxu1 %v1812_v3  ;;  %v1680_v1 = vpack.c.bf16 %v1228_v0, %v1227_v63  ;;  %v1275_v3 = vld [vmem:[%s2572_s3 + $0x1c0] sm:$0xff]  ;;  %v1233_v34 = vld [vmem:[%s2572_s3 + $0x70] sm:$0xff]  ;;  %v1266_v42 = vld [vmem:[%s2572_s3 + $0x178] sm:$0xff] }
  0x3a   :  { %v1279_v25 = vld [vmem:[%s2572_s3 + $0x1e0] sm:$0xff] }
  0x3b   :  { %664 = vmatpush1.bf16.msra.mxu0 %v1807_v5  ;;  %725 = vmatpush1.bf16.msra.mxu1 %v1810_v6  ;;  %v1710_v5 = vpack.c.bf16 %v1276_v4, %v1275_v3  ;;  %v1259_v6 = vld [vmem:[%s2572_s3 + $0x140] sm:$0xff] }
  0x3c   :  { %1583 = vmatprep.subr.msk.bf16.mxu0 %vm158_vm0, %v1580_v7  ;;  %1587 = vmatprep.subr.msk.bf16.mxu1 %vm158_vm0, %v1582_v8  ;;  %v1260_v7 = vld [vmem:[%s2572_s3 + $0x148] sm:$0xff] }
  0x3d   :  { %v1712_v8 = vpack.c.bf16 %v1260_v7, %v1259_v6 }
  0x3e   :  { %1540 = vmatmul.mubr.msk.bf16.gmra.mrb[20].mxu0 %vm148_vm1, %v2015_v49  ;;  %1544 = vmatmul.mubr.msk.bf16.gmra.mrb[20].mxu1 %vm148_vm1, %v2015_v49 }
  0x3f   :  { %666 = vmatpush1.bf16.msra.mxu0 %v646_v11  ;;  %727 = vmatpush1.bf16.msra.mxu1 %v652_v12  ;;  %v1682_v11 = vpack.c.bf16 %v1246_v10, %v1245_v9  ;;  %v1229_v12 = vld [vmem:[%s2572_s3 + $0x50] sm:$0xff] }
  0x40   :  { %689 = vmatprep.mubr.bf16.mxu0 %v1842_v2  ;;  %750 = vmatprep.mubr.bf16.mxu1 %v1842_v2 }
  0x41   :  { %1663 = vmatprep.subr.bf16.mxu0 %v1662_v15  ;;  %1695 = vmatprep.subr.bf16.mxu1 %v1694_v20  ;;  %v1684_v15 = vpack.c.bf16 %v1230_v13, %v1229_v12  ;;  %v1247_v20 = vld [vmem:[%s2572_s3 + $0xe0] sm:$0xff] }
  0x46   :  { %1584 = vmatmul.mubr.msk.bf16.vlgmr.msra.gmra.mrb[24].mxu0 %vm148_vm1, %v1945_v27  ;;  %1588 = vmatmul.mubr.msk.bf16.vlgmr.msra.gmra.mrb[24].mxu1 %vm148_vm1, %v1945_v27  ;;  %v1221_v27 = vld [vmem:[%s2572_s3 + $0x10] sm:$0xff] }
  0x47   :  { %699 = vmatprep.mubr.bf16.mxu0 %v1842_v2  ;;  %760 = vmatprep.mubr.bf16.mxu1 %v1842_v2  ;;  %v1668_v29 = vpack.c.bf16 %v1222_v28, %v1221_v27  ;;  %v1688_v27 = vpack.c.bf16 %v1232_v24, %v1231_v22 }
  0x48   :  { %1697 = vmatpush3.bf16.msra.mxu1 %v1696_v23  ;;  %v1686_v23 = vpack.c.bf16 %v1248_v21, %v1247_v20 }
  0x49   :  { %1699 = vmatprep.subr.bf16.mxu1 %v1698_v32 }
  0x4c   :  { %1701 = vmatpush3.bf16.msra.mxu1 %v1700_v35  ;;  %v1234_v35 = vld [vmem:[%s2572_s3 + $0x78] sm:$0xff] }
  0x4d   :  { %1703 = vmatprep.subr.bf16.mxu1 %v1702_v44  ;;  %v1692_v39 = vpack.c.bf16 %v1234_v35, %v1233_v34 }
  0x4e   :  { %1585 = vmatmul.mubr.msk.bf16.gmra.mrb[28].mxu0 %vm148_vm1, %v1980_v36  ;;  %1589 = vmatmul.mubr.msk.bf16.gmra.mrb[28].mxu1 %vm148_vm1, %v1980_v36  ;;  %v1239_v36 = vld [vmem:[%s2572_s3 + $0xa0] sm:$0xff] }
  0x4f   :  { %709 = vmatprep.mubr.bf16.mxu0 %v1842_v2  ;;  %770 = vmatprep.mubr.bf16.mxu1 %v1842_v2  ;;  %v1220_v2 = vld [vmem:[%s2572_s3 + $0x8] sm:$0xff]  ;;  %v1670_v38 = vpack.c.bf16 %v1240_v37, %v1239_v36  ;;  %v1690_v36 = vpack.c.bf16 %v1250_v33, %v1249_v31  ;;  %v1281_v37 = vld [vmem:[%s2572_s3 + $0x1f0] sm:$0xff] }
  0x50   :  { %v1664_v17 = vpack.c.bf16 %v1220_v2, %v1219_v16  ;;  %1705 = vmatpush3.bf16.msra.mxu1 %v1704_v47  ;;  %v1278_v16 = vld [vmem:[%s2572_s3 + $0x1d8] sm:$0xff]  ;;  %v1261_v2 = vld [vmem:[%s2572_s3 + $0x150] sm:$0xff] }
  0x51   :  { %1707 = vmatprep.subr.bf16.mxu1 %v1706_v56  ;;  %v1714_v18 = vpack.c.bf16 %v1278_v16, %v1277_v14 }
  0x52   :  { %1665 = vmatpush3.bf16.msra.mxu0 %v1664_v17  ;;  %v1262_v17 = vld [vmem:[%s2572_s3 + $0x158] sm:$0xff] }
  0x53   :  { %1667 = vmatprep.subr.bf16.mxu0 %v1666_v26  ;;  %v1716_v19 = vpack.c.bf16 %v1262_v17, %v1261_v2  ;;  %v1280_v26 = vld [vmem:[%s2572_s3 + $0x1e8] sm:$0xff] }
  0x54   :  { %1709 = vmatpush3.bf16.msra.mxu1 %v1708_v59  ;;  %v1718_v28 = vpack.c.bf16 %v1280_v26, %v1279_v25 }
  0x55   :  { %1711 = vmatprep.subr.bf16.mxu1 %v1710_v5 }
  0x56   :  { %1586 = vmatmul.mubr.msk.bf16.gmra.mrb[32].mxu0 %vm148_vm1, %v2015_v49  ;;  %1590 = vmatmul.mubr.msk.bf16.gmra.mrb[32].mxu1 %vm148_vm1, %v2015_v49  ;;  %v1242_v49 = vld [vmem:[%s2572_s3 + $0xb8] sm:$0xff] }
  0x57   :  { %1669 = vmatpush3.bf16.msra.mxu0 %v1668_v29  ;;  %v1674_v50 = vpack.c.bf16 %v1242_v49, %v1241_v48  ;;  %v1263_v29 = vld [vmem:[%s2572_s3 + $0x160] sm:$0xff] }
  0x58   :  { %1671 = vmatprep.subr.bf16.mxu0 %v1670_v38  ;;  %1713 = vmatpush3.bf16.msra.mxu1 %v1712_v8  ;;  %v1720_v32 = vpack.c.bf16 %v1264_v30, %v1263_v29  ;;  %v1282_v38 = vld [vmem:[%s2572_s3 + $0x1f8] sm:$0xff] }
  0x59   :  { %1715 = vmatprep.subr.bf16.mxu1 %v1714_v18  ;;  %v1722_v40 = vpack.c.bf16 %v1282_v38, %v1281_v37  ;;  %v879_v38 = vlaneseq }
  0x5b   :  { %1673 = vmatpush3.bf16.msra.mxu0 %v1672_v41  ;;  %v1265_v41 = vld [vmem:[%s2572_s3 + $0x170] sm:$0xff]  ;;  %vm2510_vm4 = vcmp.lt.s32.totalorder %v879_v38, 512 }
  0x5c   :  { %1675 = vmatprep.subr.bf16.mxu0 %v1674_v50  ;;  %1717 = vmatpush3.bf16.msra.mxu1 %v1716_v19  ;;  %v1724_v45 = vpack.c.bf16 %v1266_v42, %v1265_v41 }
  0x5d   :  { %1719 = vmatprep.subr.bf16.mxu1 %v1718_v28 }
  0x5f   :  { %1677 = vmatpush3.bf16.msra.mxu0 %v1676_v53 }
  0x60   :  { %1679 = vmatprep.subr.bf16.mxu0 %v1678_v62  ;;  %1721 = vmatpush3.bf16.msra.mxu1 %v1720_v32 }
  0x61   :  { %1723 = vmatprep.subr.bf16.mxu1 %v1722_v40 }
  0x63   :  { %1681 = vmatpush3.bf16.msra.mxu0 %v1680_v1 }
  0x64   :  { %1683 = vmatprep.subr.bf16.mxu0 %v1682_v11  ;;  %1725 = vmatpush3.bf16.msra.mxu1 %v1724_v45 }
  0x67   :  { %1685 = vmatpush3.bf16.msra.mxu0 %v1684_v15 }
  0x68   :  { %1687 = vmatprep.subr.bf16.mxu0 %v1686_v23 }
  0x6b   :  { %1689 = vmatpush3.bf16.msra.mxu0 %v1688_v27 }
  0x6c   :  { %1691 = vmatprep.subr.bf16.mxu0 %v1690_v36 }
  0x6f   :  { %1693 = vmatpush3.bf16.msra.mxu0 %v1692_v39 }
  0xe9   :  { %v205_v43 = vpop.f32.mrb[0].mxu0  ;;  %v266_v44 = vpop.f32.mrb[0].mxu1 }
  0xea   :  { %v207_v46 = vpop.f32.mrb[1].mxu0  ;;  %v268_v47 = vpop.f32.mrb[1].mxu1 }
  0xeb   :  { %v2311_v48 = vpop.f32.mrb[2].mxu0  ;;  %v2313_v49 = vpop.f32.mrb[2].mxu1 }
  0xec   :  { %v2315_v50 = vpop.f32.mrb[3].mxu0  ;;  %v2317_v51 = vpop.f32.mrb[3].mxu1 }
  0xf1   :  { %v2319_v52 = vpop.f32.mrb[4].mxu0  ;;  %v2321_v53 = vpop.f32.mrb[4].mxu1 }
  0xf2   :  { %v2323_v54 = vpop.f32.mrb[5].mxu0  ;;  %v2325_v55 = vpop.f32.mrb[5].mxu1 }
  0xf3   :  { %v2327_v56 = vpop.f32.mrb[6].mxu0  ;;  %v2329_v57 = vpop.f32.mrb[6].mxu1 }
  0xf4   :  { %v2331_v58 = vpop.f32.mrb[7].mxu0  ;;  %v2333_v59 = vpop.f32.mrb[7].mxu1 }
  0xf9   :  { %v2335_v60 = vpop.f32.mrb[8].mxu0  ;;  %v2337_v61 = vpop.f32.mrb[8].mxu1 }
  0xfa   :  { %v2339_v62 = vpop.f32.mrb[9].mxu0  ;;  %v2341_v63 = vpop.f32.mrb[9].mxu1 }
  0xfb   :  { %v229_v0 = vpop.f32.mrb[10].mxu0  ;;  %v290_v1 = vpop.f32.mrb[10].mxu1 }
  0xfc   :  { %v230_v3 = vpop.f32.mrb[11].mxu0  ;;  %v291_v4 = vpop.f32.mrb[11].mxu1 }
 0x101   :  { %v448_v5 = vpop.f32.mrb[12].mxu0  ;;  %v509_v6 = vpop.f32.mrb[12].mxu1 }
 0x102   :  { %v450_v7 = vpop.f32.mrb[13].mxu0  ;;  %v511_v8 = vpop.f32.mrb[13].mxu1  ;;  %v792_v11 = vrot.slane %v448_v5, 1  ;;  %v798_v12 = vrot.slane %v509_v6, 1 }
 0x103   :  { %v452_v9 = vpop.f32.mrb[14].mxu0  ;;  %v513_v10 = vpop.f32.mrb[14].mxu1  ;;  %v795_v2 = vrot.slane %v450_v7, 1  ;;  %v801_v17 = vrot.slane %v511_v8, 1 }
 0x104   :  { %v793_v13 = vrot.slane %v452_v9, 1  ;;  %v799_v14 = vrot.slane %v513_v10, 1  ;;  %v454_v15 = vpop.f32.mrb[15].mxu0  ;;  %v515_v16 = vpop.f32.mrb[15].mxu1 }
 0x105   :  { %v796_v18 = vrot.slane %v454_v15, 1  ;;  %v802_v19 = vrot.slane %v515_v16, 1 }
 0x106   :  { %v794_v20 = vsel %vm791_vm2, %v792_v11, %v793_v13  ;;  %v800_v21 = vsel %vm791_vm2, %v798_v12, %v799_v14 }
 0x107   :  { %v2345_v22 = vadd.f32 %v794_v20, %v205_v43  ;;  %v2347_v23 = vadd.f32 %v800_v21, %v266_v44  ;;  %v797_v24 = vsel %vm791_vm2, %v795_v2, %v796_v18  ;;  %v803_v25 = vsel %vm791_vm2, %v801_v17, %v802_v19 }
 0x108   :  { %v2351_v26 = vadd.f32 %v797_v24, %v207_v46  ;;  %v2353_v27 = vadd.f32 %v803_v25, %v268_v47  ;;  %v2388_v17 = vshrl.u32 %v879_v38, 7 }
 0x109   :  { %v458_v28 = vpop.f32.mrb[16].mxu0  ;;  %v519_v29 = vpop.f32.mrb[16].mxu1 }
 0x10a   :  { %v804_v30 = vrot.slane %v458_v28, 1  ;;  %v808_v31 = vrot.slane %v519_v29, 1  ;;  %v460_v32 = vpop.f32.mrb[17].mxu0  ;;  %v521_v33 = vpop.f32.mrb[17].mxu1 }
 0x10b   :  { %v806_v34 = vrot.slane %v460_v32, 1  ;;  %v810_v35 = vrot.slane %v521_v33, 1  ;;  %v462_v36 = vpop.f32.mrb[18].mxu0  ;;  %v523_v37 = vpop.f32.mrb[18].mxu1  ;;  %v885_v32 = vsub.s32 1, %v2388_v17 }
 0x10c   :  { %v805_v39 = vsel %vm791_vm2, %v793_v13, %v804_v30  ;;  %v809_v40 = vsel %vm791_vm2, %v799_v14, %v808_v31  ;;  %v985_v41 = vrot.slane %v462_v36, 1  ;;  %v989_v42 = vrot.slane %v523_v37, 1  ;;  %v464_v43 = vpop.f32.mrb[19].mxu0  ;;  %v525_v44 = vpop.f32.mrb[19].mxu1 }
 0x10d   :  { %v2358_v45 = vadd.f32 %v805_v39, %v2311_v48  ;;  %v2361_v46 = vadd.f32 %v809_v40, %v2313_v49  ;;  %v807_v47 = vsel %vm791_vm2, %v796_v18, %v806_v34  ;;  %v811_v0 = vsel %vm791_vm2, %v802_v19, %v810_v35 }
 0x10e   :  { %v2366_v1 = vadd.f32 %v807_v47, %v2315_v50  ;;  %v2369_v3 = vadd.f32 %v811_v0, %v2317_v51  ;;  %v986_v4 = vsel %vm791_vm2, %v804_v30, %v985_v41  ;;  %v990_v5 = vsel %vm791_vm2, %v808_v31, %v989_v42 }
 0x10f   :  { %v2374_v48 = vadd.f32 %v986_v4, %v2319_v52  ;;  %v2377_v49 = vadd.f32 %v990_v5, %v2321_v53  ;;  %v987_v6 = vrot.slane %v464_v43, 1  ;;  %v991_v7 = vrot.slane %v525_v44, 1  ;;  %v1073_v43 = vld [vmem:[%s2571_s2] sm:$0xf] }
 0x111   :  { %v988_v8 = vsel %vm791_vm2, %v806_v34, %v987_v6  ;;  %v992_v50 = vsel %vm791_vm2, %v810_v35, %v991_v7  ;;  %v468_v9 = vpop.f32.mrb[20].mxu0  ;;  %v529_v10 = vpop.f32.mrb[20].mxu1 }
 0x112   :  { %v2382_v51 = vadd.f32 %v988_v8, %v2323_v54  ;;  %v2385_v11 = vadd.f32 %v992_v50, %v2325_v55  ;;  %v993_v12 = vrot.slane %v468_v9, 1  ;;  %v997_v52 = vrot.slane %v529_v10, 1  ;;  %v470_v13 = vpop.f32.mrb[21].mxu0  ;;  %v531_v14 = vpop.f32.mrb[21].mxu1 }
 0x113   :  { %v995_v53 = vrot.slane %v470_v13, 1  ;;  %v999_v15 = vrot.slane %v531_v14, 1  ;;  %v472_v16 = vpop.f32.mrb[22].mxu0  ;;  %v533_v2 = vpop.f32.mrb[22].mxu1 }
 0x114   :  { %v994_v18 = vsel %vm791_vm2, %v985_v41, %v993_v12  ;;  %v2392_v19 = vadd.f32 %v993_v12, %v2335_v60  ;;  %v998_v54 = vsel %vm791_vm2, %v989_v42, %v997_v52  ;;  %v2396_v55 = vadd.f32 %v997_v52, %v2337_v61  ;;  %v473_v20 = vpop.f32.mrb[23].mxu0  ;;  %v534_v21 = vpop.f32.mrb[23].mxu1 }
 0x115   :  { %v2399_v24 = vadd.f32 %v994_v18, %v2327_v56  ;;  %v2402_v25 = vadd.f32 %v998_v54, %v2329_v57  ;;  %v996_v28 = vsel %vm791_vm2, %v987_v6, %v995_v53  ;;  %v2406_v29 = vadd.f32 %v995_v53, %v2339_v62  ;;  %v877_v62 = vld [vmem:[%s2571_s2] sm:$0xf] }
 0x116   :  { %v2409_v60 = vadd.f32 %v996_v28, %v2331_v58  ;;  %v1000_v30 = vsel %vm791_vm2, %v991_v7, %v999_v15  ;;  %v2413_v61 = vadd.f32 %v999_v15, %v2341_v63  ;;  %v881_v56 = vsub.s32 0, %v2388_v17 }
 0x117   :  { %v2416_v31 = vadd.f32 %v1000_v30, %v2333_v59  ;;  %v889_v57 = vsub.s32 2, %v2388_v17  ;;  %v893_v63 = vsub.s32 3, %v2388_v17  ;;  %v886_v40 = vrot.slane %v877_v62, %v885_v32 }
 0x118   :  { %v882_v59 = vrot.slane %v877_v62, %v881_v56  ;;  %v1843_v41 = vmov 1966171168   ;;  %v2432_v13 = vrot.slane %v1073_v43, %v881_v56  ;;  %v2442_v20 = vrot.slane %v1073_v43, %v885_v32 }
 0x119   :  { %v691_v58 = vpop.f32.mrb[24].mxu0  ;;  %v752_v33 = vpop.f32.mrb[24].mxu1  ;;  %v890_v39 = vrot.slane %v877_v62, %v889_v57  ;;  %v2425_v42 = vunpack.c.l.s4 %v1843_v41  ;;  %v894_v52 = vrot.slane %v877_v62, %v893_v63  ;;  %v2440_v54 = vrot.slane %v1073_v43, %v889_v57 }
 0x11a   :  { %v693_v34 = vpop.f32.mrb[25].mxu0  ;;  %v754_v35 = vpop.f32.mrb[25].mxu1  ;;  %v841_v44 = vrot.slane %v691_v58, 2  ;;  %v847_v47 = vrot.slane %v752_v33, 2  ;;  %v2445_v62 = vrot.slane %v1073_v43, %v893_v63 }
 0x11b   :  { %v695_v36 = vpop.f32.mrb[26].mxu0  ;;  %v756_v37 = vpop.f32.mrb[26].mxu1  ;;  %v844_v7 = vrot.slane %v693_v34, 2  ;;  %v850_v8 = vrot.slane %v754_v35, 2 }
 0x11c   :  { %v842_v0 = vrot.slane %v695_v36, 2  ;;  %v848_v4 = vrot.slane %v756_v37, 2  ;;  %v697_v5 = vpop.f32.mrb[27].mxu0  ;;  %v758_v6 = vpop.f32.mrb[27].mxu1 }
 0x11d   :  { %v845_v50 = vrot.slane %v697_v5, 2  ;;  %v851_v9 = vrot.slane %v758_v6, 2 }
 0x11e   :  { %v843_v10 = vsel %vm840_vm3, %v841_v44, %v842_v0  ;;  %v849_v12 = vsel %vm840_vm3, %v847_v47, %v848_v4 }
 0x11f   :  { %v869_v14 = vadd.f32 %v843_v10, %v2345_v22  ;;  %v871_v53 = vadd.f32 %v849_v12, %v2347_v23  ;;  %v846_v15 = vsel %vm840_vm3, %v844_v7, %v845_v50  ;;  %v852_v16 = vsel %vm840_vm3, %v850_v8, %v851_v9 }
 0x120   :  { %v870_v2 = vadd.f32 %v846_v15, %v2351_v26  ;;  %v872_v18 = vadd.f32 %v852_v16, %v2353_v27  ;;  %v951_v22 = vunpack.c.0.s8 %v2425_v42 }
 0x121   :  { %v899_v21 = vadd.f32 %v882_v59, %v869_v14  ;;  %v901_v28 = vadd.f32 %v890_v39, %v871_v53  ;;  %v701_v30 = vpop.f32.mrb[28].mxu0  ;;  %v762_v56 = vpop.f32.mrb[28].mxu1 }
 0x122   :  { %v900_v23 = vadd.f32 %v886_v40, %v870_v2  ;;  %v902_v58 = vadd.f32 %v894_v52, %v872_v18  ;;  %v853_v33 = vrot.slane %v701_v30, 2  ;;  %v857_v34 = vrot.slane %v762_v56, 2  ;;  %v703_v35 = vpop.f32.mrb[29].mxu0  ;;  %v764_v26 = vpop.f32.mrb[29].mxu1 }
 0x123   :  { %v907_v36 = vmax.f32 %v899_v21, 0.0  ;;  %v909_v27 = vmax.f32 %v901_v28, 0.0  ;;  %v855_v57 = vrot.slane %v703_v35, 2  ;;  %v859_v37 = vrot.slane %v764_v26, 2  ;;  %v2447_v32 = vpop.f32.mrb[30].mxu0  ;;  %v2449_v41 = vpop.f32.mrb[30].mxu1 }
 0x124   :  { %v908_v44 = vmax.f32 %v900_v23, 0.0  ;;  %v910_v47 = vmax.f32 %v902_v58, 0.0  ;;  %v854_v5 = vsel %vm840_vm3, %v842_v0, %v853_v33  ;;  %v858_v63 = vsel %vm840_vm3, %v848_v4, %v857_v34  ;;  %v2453_v43 = vpop.f32.mrb[31].mxu0  ;;  %v2455_v6 = vpop.f32.mrb[31].mxu1 }
 0x125   :  { %v873_v7 = vadd.f32 %v854_v5, %v2358_v45  ;;  %v875_v8 = vadd.f32 %v858_v63, %v2361_v46  ;;  %v856_v10 = vsel %vm840_vm3, %v845_v50, %v855_v57  ;;  %v860_v12 = vsel %vm840_vm3, %v851_v9, %v859_v37 }
 0x126   :  { %v874_v14 = vadd.f32 %v856_v10, %v2366_v1  ;;  %v876_v53 = vadd.f32 %v860_v12, %v2369_v3  ;;  %v1033_v0 = vrot.slane %v2447_v32, 2  ;;  %v1037_v4 = vrot.slane %v2449_v41, 2 }
 0x127   :  { %v903_v15 = vadd.f32 %v882_v59, %v873_v7  ;;  %v905_v16 = vadd.f32 %v890_v39, %v875_v8  ;;  %v1035_v2 = vrot.slane %v2453_v43, 2  ;;  %v1039_v45 = vrot.slane %v2455_v6, 2 }
 0x128   :  { %v904_v18 = vadd.f32 %v886_v40, %v874_v14  ;;  %v906_v46 = vadd.f32 %v894_v52, %v876_v53  ;;  %v1034_v50 = vsel %vm840_vm3, %v853_v33, %v1033_v0  ;;  %v1038_v1 = vsel %vm840_vm3, %v857_v34, %v1037_v4 }
 0x129   :  { %v911_v9 = vmax.f32 %v903_v15, 0.0  ;;  %v913_v3 = vmax.f32 %v905_v16, 0.0  ;;  %v1061_v21 = vadd.f32 %v1034_v50, %v2374_v48  ;;  %v1063_v28 = vadd.f32 %v1038_v1, %v2377_v49  ;;  %v711_v59 = vpop.f32.mrb[32].mxu0  ;;  %v772_v39 = vpop.f32.mrb[32].mxu1 }
 0x12a   :  { %v912_v30 = vmax.f32 %v904_v18, 0.0  ;;  %v914_v56 = vmax.f32 %v906_v46, 0.0  ;;  %v1036_v40 = vsel %vm840_vm3, %v855_v57, %v1035_v2  ;;  %v1040_v52 = vsel %vm840_vm3, %v859_v37, %v1039_v45  ;;  %v2479_v23 = vpop.f32.mrb[33].mxu0  ;;  %v2481_v58 = vpop.f32.mrb[33].mxu1 }
 0x12b   :  { %v915_v33 = vadd.f32 %v911_v9, %v907_v36  ;;  %v929_v48 = vadd.f32 %v913_v3, %v909_v27  ;;  %v1095_v49 = vadd.f32 %v2432_v13, %v1061_v21  ;;  %v1097_v34 = vadd.f32 %v2440_v54, %v1063_v28  ;;  %v715_v35 = vpop.f32.mrb[34].mxu0  ;;  %v776_v26 = vpop.f32.mrb[34].mxu1 }
 0x12c   :  { %v922_v32 = vadd.f32 %v912_v30, %v908_v44  ;;  %v936_v5 = vadd.f32 %v914_v56, %v910_v47  ;;  %v1062_v57 = vadd.f32 %v1036_v40, %v2382_v51  ;;  %v1064_v63 = vadd.f32 %v1040_v52, %v2385_v11  ;;  %v716_v7 = vpop.f32.mrb[35].mxu0  ;;  %v777_v37 = vpop.f32.mrb[35].mxu1 }
 0x12d   :  { %v916_v8 = vrot.slane %v915_v33, 4  ;;  %v930_v10 = vrot.slane %v929_v48, 4  ;;  %v1107_v12 = vmax.f32 %v1095_v49, 0.0  ;;  %v1109_v27 = vmax.f32 %v1097_v34, 0.0 }
 0x12e   :  { %v923_v14 = vrot.slane %v922_v32, 4  ;;  %v937_v36 = vrot.slane %v936_v5, 4  ;;  %v2488_v53 = vadd.f32 %v2442_v20, %v1062_v57  ;;  %v2493_v44 = vsub.s32 %v951_v22, %v2388_v17 }
 0x12f   :  { %v917_v15 = vadd.f32 %v916_v8, %v915_v33  ;;  %v931_v16 = vadd.f32 %v930_v10, %v929_v48  ;;  %v1131_v47 = vrot.slane %v1107_v12, 2  ;;  %v2496_v18 = vadd.f32 %v2445_v62, %v1064_v63 }
 0x130   :  { %v924_v51 = vadd.f32 %v923_v14, %v922_v32  ;;  %v938_v11 = vadd.f32 %v937_v36, %v936_v5  ;;  %v1041_v1 = vrot.slane %v711_v59, 2  ;;  %v1045_v9 = vrot.slane %v772_v39, 2 }
 0x131   :  { %v918_v46 = vrot.slane %v917_v15, 2  ;;  %v932_v50 = vrot.slane %v931_v16, 2  ;;  %v1137_v28 = vrot.slane %v1109_v27, 2  ;;  %v1108_v30 = vmax.f32 %v2488_v53, 0.0 }
 0x132   :  { %v925_v3 = vrot.slane %v924_v51, 2  ;;  %v939_v21 = vrot.slane %v938_v11, 2  ;;  %v1042_v42 = vsel %vm840_vm3, %v1033_v0, %v1041_v1  ;;  %v1069_v22 = vadd.f32 %v1041_v1, %v2392_v19 }
 0x133   :  { %v919_v56 = vadd.f32 %v918_v46, %v917_v15  ;;  %v933_v40 = vadd.f32 %v932_v50, %v931_v16  ;;  %v1065_v48 = vadd.f32 %v1042_v42, %v2399_v24  ;;  %v1046_v59 = vsel %vm840_vm3, %v1037_v4, %v1045_v9 }
 0x134   :  { %v926_v52 = vadd.f32 %v925_v3, %v924_v51  ;;  %v940_v33 = vadd.f32 %v939_v21, %v938_v11  ;;  %v1103_v34 = vadd.f32 %v2432_v13, %v1069_v22  ;;  %v1067_v35 = vadd.f32 %v1046_v59, %v2402_v25 }
 0x135   :  { %v920_v39 = vrot.slane %v919_v56, 1  ;;  %v934_v49 = vrot.slane %v933_v40, 1  ;;  %v1099_v0 = vadd.f32 %v2432_v13, %v1065_v48  ;;  %v1071_v19 = vadd.f32 %v1045_v9, %v2396_v55 }
 0x136   :  { %v927_v26 = vrot.slane %v926_v52, 1  ;;  %v941_v32 = vrot.slane %v940_v33, 1  ;;  %v1115_v41 = vmax.f32 %v1103_v34, 0.0  ;;  %v1101_v4 = vadd.f32 %v2440_v54, %v1067_v35 }
 0x137   :  { %v921_v5 = vadd.f32 %v920_v39, %v919_v56  ;;  %v935_v57 = vadd.f32 %v934_v49, %v933_v40  ;;  %v1111_v37 = vmax.f32 %v1099_v0, 0.0  ;;  %v1105_v25 = vadd.f32 %v2440_v54, %v1071_v19 }
 0x138   :  { %v928_v63 = vadd.f32 %v927_v26, %v926_v52  ;;  %v942_v7 = vadd.f32 %v941_v32, %v940_v33  ;;  %v1143_v8 = vrot.slane %v1115_v41, 2  ;;  %v1113_v10 = vmax.f32 %v1101_v4, 0.0 }
 0x139   :  { %v1043_v13 = vrot.slane %v2479_v23, 2  ;;  %v1047_v55 = vrot.slane %v2481_v58, 2  ;;  %v1132_v38 = vrot.slane %v1111_v37, 2  ;;  %v1117_v36 = vmax.f32 %v1105_v25, 0.0 }
 0x13a   :  { %v947_v12 = vcombine.low %v921_v5, %v928_v63  ;;  %v948_v14 = vcombine.low %v935_v57, %v942_v7  ;;  %v1138_v27 = vrot.slane %v1113_v10, 2  ;;  %v1110_v9 = vmax.f32 %v2496_v18, 0.0 }
 0x13b   :  { %v1044_v15 = vsel %vm840_vm3, %v1035_v2, %v1043_v13  ;;  %v1070_v16 = vadd.f32 %v1043_v13, %v2406_v29  ;;  %v1048_v54 = vsel %vm840_vm3, %v1039_v45, %v1047_v55  ;;  %v1133_v58 = vsel %vm840_vm3, %v1131_v47, %v1132_v38 }
 0x13c   :  { %v955_v51 = vrot.slane %v947_v12, %v2493_v44  ;;  %v962_v23 = vrot.slane %v948_v14, %v2493_v44  ;;  %v1144_v11 = vsel %vm840_vm3, %v1132_v38, %v1143_v8  ;;  %v1139_v50 = vsel %vm840_vm3, %v1137_v28, %v1138_v27 }
 0x13d   :  { %v1159_v46 = vadd.f32 %v1144_v11, %v1133_v58  ;;  %v1147_v43 = vrot.slane %v1117_v36, 2  ;;  %v1066_v2 = vadd.f32 %v1044_v15, %v2409_v60  ;;  %v1104_v29 = vadd.f32 %v2442_v20, %v1070_v16 }
 0x13e   :  { %v963_v1 = vcombine.low %v955_v51, %v962_v23  ;;  %v1068_v6 = vadd.f32 %v1048_v54, %v2416_v31  ;;  %v1072_v45 = vadd.f32 %v1047_v55, %v2413_v61  ;;  %v1134_v33 = vrot.slane %v1108_v30, 2 }
 0x13f   :  { %v1160_v3 = vrot.slane %v1159_v46, 4  ;;  %v1148_v47 = vsel %vm840_vm3, %v1138_v27, %v1147_v43  ;;  %v1100_v21 = vadd.f32 %v2442_v20, %v1066_v2  ;;  %v1116_v40 = vmax.f32 %v1104_v29, 0.0 }
 0x140   :  { %v970_v56 = vrot.slane %v963_v1, %v2493_v44  ;;  %v1173_v28 = vadd.f32 %v1148_v47, %v1139_v50  ;;  %v1102_v60 = vadd.f32 %v2445_v62, %v1068_v6  ;;  %v1106_v52 = vadd.f32 %v2445_v62, %v1072_v45 }
 0x141   :  { %v1161_v42 = vadd.f32 %v1160_v3, %v1159_v46  ;;  %v1112_v22 = vmax.f32 %v1100_v21, 0.0  ;;  %v1145_v31 = vrot.slane %v1116_v40, 2  ;;  %v1140_v59 = vrot.slane %v1110_v9, 2 }
 0x142   :  { %976 = vst.msk [vmem:[#allocation2] ss:$2 sm:$0xf] %vm2510_vm4, %v970_v56  ;;  %v1174_v61 = vrot.slane %v1173_v28, 4  ;;  %v1114_v18 = vmax.f32 %v1102_v60, 0.0  ;;  %v1118_v48 = vmax.f32 %v1106_v52, 0.0 }
 0x143   :  { %v1135_v20 = vrot.slane %v1112_v22, 2  ;;  %v1162_v39 = vrot.slane %v1161_v42, 2  ;;  %v1844_v11 = vmov 1983009808  }
 0x144   :  { %v1175_v49 = vadd.f32 %v1174_v61, %v1173_v28  ;;  %v1141_v34 = vrot.slane %v1114_v18, 2  ;;  %v1149_v62 = vrot.slane %v1118_v48, 2  ;;  %v1293_v46 = vunpack.c.l.s4 %v1844_v11 }
 0x145   :  { %v1136_v35 = vsel %vm840_vm3, %v1134_v33, %v1135_v20  ;;  %v1146_v26 = vsel %vm840_vm3, %v1135_v20, %v1145_v31  ;;  %v1163_v57 = vadd.f32 %v1162_v39, %v1161_v42 }
 0x146   :  { %v1176_v32 = vrot.slane %v1175_v49, 2  ;;  %v1166_v0 = vadd.f32 %v1146_v26, %v1136_v35  ;;  %v1142_v19 = vsel %vm840_vm3, %v1140_v59, %v1141_v34  ;;  %v1150_v5 = vsel %vm840_vm3, %v1141_v34, %v1149_v62 }
 0x147   :  { %v1180_v30 = vadd.f32 %v1150_v5, %v1142_v19  ;;  %v1164_v7 = vrot.slane %v1163_v57, 1  ;;  %v1294_v43 = vunpack.c.0.s8 %v1293_v46 }
 0x148   :  { %v1167_v53 = vrot.slane %v1166_v0, 4  ;;  %v1177_v41 = vadd.f32 %v1176_v32, %v1175_v49 }
 0x149   :  { %v1181_v63 = vrot.slane %v1180_v30, 4  ;;  %v1165_v55 = vadd.f32 %v1164_v7, %v1163_v57  ;;  %v1297_v2 = vsub.s32 %v1294_v43, %v2388_v17 }
 0x14a   :  { %v1168_v4 = vadd.f32 %v1167_v53, %v1166_v0  ;;  %v1178_v8 = vrot.slane %v1177_v41, 1 }
 0x14b   :  { %v1182_v25 = vadd.f32 %v1181_v63, %v1180_v30 }
 0x14c   :  { %v1169_v37 = vrot.slane %v1168_v4, 2  ;;  %v1179_v38 = vadd.f32 %v1178_v8, %v1177_v41 }
 0x14d   :  { %v1183_v13 = vrot.slane %v1182_v25, 2 }
 0x14e   :  { %v1170_v10 = vadd.f32 %v1169_v37, %v1168_v4 }
 0x14f   :  { %v1184_v14 = vadd.f32 %v1183_v13, %v1182_v25 }
 0x150   :  { %v1171_v12 = vrot.slane %v1170_v10, 1 }
 0x151   :  { %v1185_v27 = vrot.slane %v1184_v14, 1 }
 0x152   :  { %v1172_v36 = vadd.f32 %v1171_v12, %v1170_v10 }
 0x153   :  { %v1186_v16 = vadd.f32 %v1185_v27, %v1184_v14 }
 0x154   :  { %v1191_v15 = vcombine.low %v1165_v55, %v1172_v36 }
 0x155   :  { %v1192_v51 = vcombine.low %v1179_v38, %v1186_v16 }
 0x156   :  { %v1199_v54 = vrot.slane %v1191_v15, %v2493_v44 }
 0x157   :  { %v1206_v23 = vrot.slane %v1192_v51, %v2493_v44 }
 0x159   :  { %v1207_v58 = vcombine.low %v1199_v54, %v1206_v23 }
 0x15b   :  { %v1214_v50 = vrot.slane %v1207_v58, %v2493_v44  ;;  %v1591_v44 = vld [vmem:[%s2573_s4] ss:$0 sm:$0xff] }
 0x15d   :  { %1217 = vst.msk [vmem:[#allocation2 + $0x1] ss:$2 sm:$0xf] %vm2510_vm4, %v1214_v50 }
 0x164   :  { %v1218_v1 = vld [vmem:[#allocation2] sm:$0xff] }
 0x165   :  { %v1298_v29 = vrot.slane %v1218_v1, %v1297_v2  ;;  %v1291_v6 = vcombine.high %v1218_v1, %v1218_v1 }
 0x167   :  { %v1306_v45 = vcombine.high %v1298_v29, %v1298_v29  ;;  %v1305_v9 = vrot.slane %v1291_v6, %v1297_v2 }
 0x169   :  { %1376 = vmatprep.mubr.f32.mxu0 %v1306_v45  ;;  %v1307_v3 = vcombine.high %v1305_v9, %v1305_v9 }
 0x16a   :  { %1377 = vmatmul.mubr.f32.vlgmr.msra.gmra.mrb[36].mxu0 %v1298_v29 }
 0x16b   :  { %1446 = vmatprep.mubr.f32.mxu1 %v1307_v3 }
 0x16c   :  { %1447 = vmatmul.mubr.f32.vlgmr.msra.gmra.mrb[36].mxu1 %v1305_v9 }
 0x23d   :  { %v1624_v47 = vpop.f32.mrb[36].mxu0 }
 0x23e   :  { %v1625_v24 = vpop.f32.mrb[37].mxu0 }
 0x23f   :  { %v1626_v21 = vadd.f32 %v1625_v24, %v1624_v47  ;;  %v1659_v56 = vpop.f32.mrb[36].mxu1 }
 0x240   :  { %v1660_v28 = vpop.f32.mrb[37].mxu1 }
 0x241   :  { %v1379_v17 = vadd.f32 %v1626_v21, %v1591_v44  ;;  %v1661_v40 = vadd.f32 %v1660_v28, %v1659_v56 }
 0x243   :  { %v1449_v60 = vadd.f32 %v1661_v40, %v1379_v17 }
 0x245   :  { %1453 = vst.msk [vmem:[#allocation3] sm:$0x3] %vm1452_vm5, %v1449_v60 }
 0x246   :  { %1829 = shalt.err (!%p1826_p4)
}
 0x247   :  { %s1830_s30 = scalar_lea.hbm %s2574_s5, 32 }
 0x248   :  { %p1831_p5 = scmp.ne.s32.totalorder %s2574_s5, %s1830_s30  ;;  %p1834_p6 = scmp.lt.u32.totalorder %s1830_s30, %s2574_s5 }
 0x24a   :  { %p1836_p7 = pnand %p1834_p6, %p1831_p5 }
 0x24c   :  { %1839 = shalt.err (!%p1836_p7)
}
 0x24d   :  { %1463 = dma.vmem_to_hbm [thread:$0]  %s1461_s28, 32, %s2574_s5, [#allocation4]  }
 0x24e   :  { %1840 = dma.done.wait [#allocation4], 32  }
 0x24f   :  { %1841 = vsyncadd [#allocation4], 4294967264 }
 0x250   :  { %1467 = vsyncpa [#allocation4], 1 }

</bundles_post_ra>
